<compile_context>
chip_gen: v7x
topology: tpu7x:2x2x1
jax: 0.10.0
libtpu: 0.0.40
codegen_flags: <defaults>
</compile_context>

<pallas_src>
import functools

import jax
import jax.numpy as jnp
from jax.experimental import pallas as pl
from jax.experimental.pallas import tpu as pltpu


# --------------------------------------------------------------------------- #
# Kernels
# --------------------------------------------------------------------------- #
def _leaky_relu(y, slope=0.2):
    # LeakyReLU(0.2): max(y, 0.2*y) — exact for slope < 1, two VPU ops.
    return jnp.maximum(y, slope * y)


def _identity_kernel(x_ref, w_ref, b_ref, out_ref):
    """Din == Dout: shortcut is Identity.  out = leaky_relu(x@W + b) + x."""
    x_f32 = x_ref[...].astype(jnp.float32)                         # residual in f32
    x_mxu = x_ref[...].astype(w_ref.dtype)                         # bf16 for the MXU
    y = jnp.dot(x_mxu, w_ref[...], preferred_element_type=jnp.float32) + b_ref[...]
    out_ref[...] = (_leaky_relu(y) + x_f32).astype(out_ref.dtype)


def _fused_proj_kernel(x_ref, wf_ref, bf_ref, out_ref, *, d_out):
    """Din != Dout, Dout % 128 == 0: main+shortcut weights fused on shared LHS.

    wf = concat([W_main, W_shortcut], 1); the split at d_out is 128-lane
    aligned so the slices are views (no XLU relayout).
    """
    x_mxu = x_ref[...].astype(wf_ref.dtype)
    y = jnp.dot(x_mxu, wf_ref[...],
                preferred_element_type=jnp.float32) + bf_ref[...]   # [tm, 2*Dout] f32
    out_ref[...] = (_leaky_relu(y[:, :d_out]) + y[:, d_out:]).astype(out_ref.dtype)


def _split_proj_kernel(x_ref, w_ref, b_ref, ws_ref, bs_ref, out_ref):
    """Din != Dout, Dout not a 128-multiple: two dots on the resident RHS
    (a second MXU push is cheaper than a lane-misaligned slice/relayout)."""
    x_mxu = x_ref[...].astype(w_ref.dtype)
    main = jnp.dot(x_mxu, w_ref[...], preferred_element_type=jnp.float32) + b_ref[...]
    short = jnp.dot(x_mxu, ws_ref[...], preferred_element_type=jnp.float32) + bs_ref[...]
    out_ref[...] = (_leaky_relu(main) + short).astype(out_ref.dtype)


# --------------------------------------------------------------------------- #
# Budgets / tiling
# --------------------------------------------------------------------------- #
def _tpu_budgets():
    """(scoped vmem_limit_bytes, row-tile cap) derived from the chip generation."""
    try:
        physical = int(pltpu.get_tpu_info().vmem_capacity_bytes)
    except Exception:
        physical = 64 * 1024 * 1024            # conservative default (v7x per-TC)
    vmem_limit = (physical * 3) // 4           # ~48 MiB on v7x, ~96 MiB on v5e/v6e
    cap = 1024 if physical >= (128 << 20) else 512
    return vmem_limit, cap


def _pick_block_m(m, cap, vmem_limit, weight_bytes, d_in, d_out, x_itemsize):
    """Row tile: big, multiple of 8, >=2 grid steps for moderate M, fits VMEM."""
    if m <= 64:
        return m                                # single full block (full-dim shape)
    # Keep >= 2 grid steps so ("parallel",) can shard across v7x's 2 TensorCores.
    half = ((-(-m // 2)) + 7) // 8 * 8
    bm = min(cap, half)
    # Fit: single-buffered weights + double-buffered x/out tiles + f32 temps.
    per_row = 2 * (d_in + d_out) * x_itemsize + 4 * (d_in + 2 * d_out)
    budget = vmem_limit - weight_bytes - (4 << 20)   # margin for compiler scratch
    if budget > per_row * 8:
        bm = min(bm, max(8, (budget // per_row) // 8 * 8))
    # TODO(synk): K/N grid tiling + VMEM accumulator when weight_bytes alone
    # exceeds the per-generation budget (very large Din/Dout layers).
    return bm


def _resident_spec(shape):
    """Constant index_map operand: resident in VMEM, single-buffered."""
    idx_map = lambda i: (0,) * len(shape)
    try:
        return pl.BlockSpec(shape, idx_map, pipeline_mode=pl.Buffered(1))
    except TypeError:   # older Pallas without pipeline_mode on BlockSpec
        return pl.BlockSpec(shape, idx_map)


# --------------------------------------------------------------------------- #
# Params (hoisted fusion / dtype prep — done once, cached by caller)
# --------------------------------------------------------------------------- #
def init_params(key, d_in, d_out):
    """Weights stored as [in, out] so the kernel computes x @ W + b (PyTorch init-style)."""
    ks = jax.random.split(key, 4)
    scale = 0.1
    w = scale * jax.random.normal(ks[0], (d_in, d_out), jnp.float32)
    b = scale * jax.random.normal(ks[1], (1, d_out), jnp.float32)
    if d_in != d_out:
        ws = scale * jax.random.normal(ks[2], (d_in, d_out), jnp.float32)
        bs = scale * jax.random.normal(ks[3], (1, d_out), jnp.float32)
    else:
        ws, bs = None, None
    return (w, b, ws, bs)


def prepare_params(params, mxu_dtype=jnp.bfloat16):
    """Hoisted per-model prep: cast weights to the MXU dtype (bf16 halves weight
    DMA/VMEM), fuse main+shortcut weights only when the split stays lane-aligned."""
    w, b, ws, bs = params
    d_in, d_out = w.shape
    b = b.astype(jnp.float32)
    if ws is None:
        return {"mode": "identity", "d_in": d_in, "d_out": d_out,
                "weights": (w.astype(mxu_dtype), b)}
    if d_out % 128 == 0:
        wf = jnp.concatenate([w, ws], axis=1).astype(mxu_dtype)     # [Din, 2*Dout]
        bf = jnp.concatenate([b, bs], axis=1).astype(jnp.float32)   # [1, 2*Dout]
        return {"mode": "fused", "d_in": d_in, "d_out": d_out, "weights": (wf, bf)}
    return {"mode": "split", "d_in": d_in, "d_out": d_out,
            "weights": (w.astype(mxu_dtype), b,
                        ws.astype(mxu_dtype), bs.astype(jnp.float32))}


# --------------------------------------------------------------------------- #
# Forward
# --------------------------------------------------------------------------- #
def residual_block(x, prepared, *, block_m=None):
    """ResidualBlock.forward for x of shape [..., Din] via one pallas_call."""
    mode = prepared["mode"]
    d_in, d_out = prepared["d_in"], prepared["d_out"]
    weights = prepared["weights"]

    lead = x.shape[:-1]
    m = 1
    for s in lead:
        m *= s
    x2 = x.reshape(m, d_in)

    vmem_limit, cap = _tpu_budgets()
    if block_m is not None:
        cap = block_m

    weight_bytes = sum(int(a.size) * a.dtype.itemsize for a in weights)
    bm = _pick_block_m(m, cap, vmem_limit, weight_bytes, d_in, d_out,
                       x2.dtype.itemsize)
    grid = (pl.cdiv(m, bm),)   # Pallas masks the padded tail block

    if mode == "identity":
        kernel = _identity_kernel
        mxu_cols = d_out
    elif mode == "fused":
        kernel = functools.partial(_fused_proj_kernel, d_out=d_out)
        mxu_cols = 2 * d_out
    else:
        kernel = _split_proj_kernel
        mxu_cols = 2 * d_out

    weight_specs = [_resident_spec(a.shape) for a in weights]

    cost = pl.CostEstimate(
        flops=2 * m * d_in * mxu_cols + 4 * m * d_out,
        transcendentals=0,
        bytes_accessed=int(x2.size) * x2.dtype.itemsize
        + weight_bytes
        + m * d_out * x2.dtype.itemsize,
    )

    out = pl.pallas_call(
        kernel,
        out_shape=jax.ShapeDtypeStruct((m, d_out), x.dtype),
        grid_spec=pltpu.PrefetchScalarGridSpec(
            num_scalar_prefetch=0,
            grid=grid,
            in_specs=[pl.BlockSpec((bm, d_in), lambda i: (i, 0))] + weight_specs,
            out_specs=pl.BlockSpec((bm, d_out), lambda i: (i, 0)),
        ),
        compiler_params=pltpu.CompilerParams(
            dimension_semantics=("parallel",),
            vmem_limit_bytes=vmem_limit,
        ),
        cost_estimate=cost,
    )(x2, *weights)
    return out.reshape(*lead, d_out)


def reference(x, params):
    """Pure-JAX f32 reference matching the PyTorch forward exactly."""
    w, b, ws, bs = params
    main = x @ w + b[0]
    main = jnp.where(main >= 0, main, 0.2 * main)
    identity = x if ws is None else x @ ws + bs[0]
    return main + identity


# --------------------------------------------------------------------------- #
# Self-test
# --------------------------------------------------------------------------- #
if __name__ == "__main__":
    key = jax.random.PRNGKey(0)
    k_x1, k_p1, k_x2, k_p2, k_x3, k_p3 = jax.random.split(key, 6)

    B, S = 2, 8   # rows flatten to M = 16 inside the wrapper

    # bf16-MXU path vs f32 reference -> loosened tolerance (expected rounding).
    BF16_TOL = dict(atol=5e-2, rtol=5e-2)
    F32_TOL = dict(atol=1e-4, rtol=1e-4)

    # Case 1: Din == Dout  -> Identity shortcut.
    D = 32
    x1 = jax.random.normal(k_x1, (B, S, D), jnp.float32)
    p1 = init_params(k_p1, D, D)
    ref1 = reference(x1, p1)
    out1 = jax.block_until_ready(residual_block(x1, prepare_params(p1)))
    assert out1.shape == (B, S, D)
    assert jnp.allclose(out1, ref1, **BF16_TOL), (
        f"identity/bf16: max abs err {float(jnp.max(jnp.abs(out1 - ref1)))}")
    # Same case with f32 MXU operands -> tight tolerance (verifies plumbing).
    out1f = jax.block_until_ready(
        residual_block(x1, prepare_params(p1, mxu_dtype=jnp.float32)))
    assert jnp.allclose(out1f, ref1, **F32_TOL), (
        f"identity/f32: max abs err {float(jnp.max(jnp.abs(out1f - ref1)))}")

    # Case 2: Din != Dout, Dout % 128 != 0 -> split-weight projection path.
    D_IN, D_OUT = 32, 64
    x2 = jax.random.normal(k_x2, (B, S, D_IN), jnp.float32)
    p2 = init_params(k_p2, D_IN, D_OUT)
    ref2 = reference(x2, p2)
    out2 = jax.block_until_ready(residual_block(x2, prepare_params(p2)))
    assert out2.shape == (B, S, D_OUT)
    assert jnp.allclose(out2, ref2, **BF16_TOL), (
        f"proj-split: max abs err {float(jnp.max(jnp.abs(out2 - ref2)))}")

    # Case 3: Din != Dout, Dout % 128 == 0 -> fused-weight projection path.
    D_IN3, D_OUT3 = 32, 128
    x3 = jax.random.normal(k_x3, (B, S, D_IN3), jnp.float32)
    p3 = init_params(k_p3, D_IN3, D_OUT3)
    ref3 = reference(x3, p3)
    out3 = jax.block_until_ready(residual_block(x3, prepare_params(p3)))
    assert out3.shape == (B, S, D_OUT3)
    assert jnp.allclose(out3, ref3, **BF16_TOL), (
        f"proj-fused: max abs err {float(jnp.max(jnp.abs(out3 - ref3)))}")

    print("KERNEL_OK")
</pallas_src>

<mosaic_0001>
module attributes {stable_mosaic.version = 11 : i64} {
  func.func @_identity_kernel(%arg0: i32, %arg1: memref<16x32xf32, #tpu.memory_space<vmem>>, %arg2: memref<32x32xbf16, #tpu.memory_space<vmem>>, %arg3: memref<1x32xf32, #tpu.memory_space<vmem>>, %arg4: memref<16x32xf32, #tpu.memory_space<vmem>>) attributes {dimension_semantics = [#tpu.dimension_semantics<parallel>], iteration_bounds = array<i64: 1>, scalar_prefetch = 0 : i64, scratch_operands = 0 : i64, tpu.core_type = #tpu.core_type<tc>, window_params = [{transform_indices = @transform_0, window_bounds = array<i64: 16, 32>}, {pipeline_mode = #tpu.pipeline_mode<synchronous>, transform_indices = @transform_1, window_bounds = array<i64: 32, 32>}, {pipeline_mode = #tpu.pipeline_mode<synchronous>, transform_indices = @transform_2, window_bounds = array<i64: 1, 32>}, {transform_indices = @transform_3, window_bounds = array<i64: 16, 32>}]} {
    %c0 = arith.constant 0 : index
    %c0_0 = arith.constant 0 : index
    %0 = vector.load %arg1[%c0, %c0_0] : memref<16x32xf32, #tpu.memory_space<vmem>>, vector<16x32xf32>
    %c0_1 = arith.constant 0 : index
    %c0_2 = arith.constant 0 : index
    %1 = vector.load %arg1[%c0_1, %c0_2] : memref<16x32xf32, #tpu.memory_space<vmem>>, vector<16x32xf32>
    %2 = arith.truncf %1 : vector<16x32xf32> to vector<16x32xbf16>
    %c0_3 = arith.constant 0 : index
    %c0_4 = arith.constant 0 : index
    %3 = vector.load %arg2[%c0_3, %c0_4] : memref<32x32xbf16, #tpu.memory_space<vmem>>, vector<32x32xbf16>
    %cst = arith.constant dense<0.000000e+00> : vector<16x32xf32>
    %4 = tpu.matmul %2, %3, %cst {dimension_numbers = #tpu.dot_dimension_numbers<[1], [0], [0], [1], [0, 0, 1, 1], [], []>} : vector<16x32xbf16>, vector<32x32xbf16>, vector<16x32xf32> -> vector<16x32xf32>
    %c0_5 = arith.constant 0 : index
    %c0_6 = arith.constant 0 : index
    %5 = vector.load %arg3[%c0_5, %c0_6] : memref<1x32xf32, #tpu.memory_space<vmem>>, vector<1x32xf32>
    %6 = vector.broadcast %5 : vector<1x32xf32> to vector<16x32xf32>
    %7 = arith.addf %4, %6 : vector<16x32xf32>
    %cst_7 = arith.constant 2.000000e-01 : f32
    %8 = vector.broadcast %cst_7 : f32 to vector<16x32xf32>
    %9 = arith.mulf %8, %7 : vector<16x32xf32>
    %10 = arith.maximumf %7, %9 : vector<16x32xf32>
    %11 = arith.addf %10, %0 : vector<16x32xf32>
    %c0_8 = arith.constant 0 : index
    %c0_9 = arith.constant 0 : index
    %12 = vector.load %arg4[%c0_8, %c0_9] : memref<16x32xf32, #tpu.memory_space<vmem>>, vector<16x32xf32>
    tpu.vector_store %arg4[%c0_8, %c0_9], %11 {strides = array<i32>} : memref<16x32xf32, #tpu.memory_space<vmem>>, vector<16x32xf32>,
    return
  }
  func.func @transform_0(%arg0: i32) -> (i32, i32) {
    %c0_i32 = arith.constant 0 : i32
    %c0_i32_0 = arith.constant 0 : i32
    return %arg0, %c0_i32 : i32, i32
  }
  func.func @transform_1(%arg0: i32) -> (i32, i32) {
    %c0_i32 = arith.constant 0 : i32
    %c0_i32_0 = arith.constant 0 : i32
    %c0_i32_1 = arith.constant 0 : i32
    return %c0_i32, %c0_i32_0 : i32, i32
  }
  func.func @transform_2(%arg0: i32) -> (i32, i32) {
    %c0_i32 = arith.constant 0 : i32
    %c0_i32_0 = arith.constant 0 : i32
    %c0_i32_1 = arith.constant 0 : i32
    return %c0_i32, %c0_i32_0 : i32, i32
  }
  func.func @transform_3(%arg0: i32) -> (i32, i32) {
    %c0_i32 = arith.constant 0 : i32
    %c0_i32_0 = arith.constant 0 : i32
    return %arg0, %c0_i32 : i32, i32
  }
}

</mosaic_0001>

<bundles_post_ra>
// kernel: tpu_custom_call.1
= control target key start
LH: loop header
LB: loop body
LE: loop exit
PB: predicated region body
PF: predicated region fallthrough
CT: control target
= control target key end

     0   :  { %8 = vsyncpa [#allocation3], 0  ;;  %s316_s0 = inlined_call_operand.hbm [shape: f32[16,32], index: 0, kind: input, shape index: {}]   ;;  %s317_s1 = inlined_call_operand.hbm [shape: bf16[32,32], index: 1, kind: input, shape index: {}]   ;;  %s318_s2 = inlined_call_operand.vmem [shape: f32[1,32], index: 2, kind: input, shape index: {}]   ;;  %s319_s3 = inlined_call_operand.hbm [shape: f32[16,32], index: 3, kind: output, shape index: {}]  }
   0x1   :  { %9 = vsyncpa [#allocation6], 0 }
   0x2   :  { %10 = vsyncpa [#allocation4], 0  ;;  %s239_s12 = smov [#allocation2]   ;;  %s167_s16 = scalar_lea.hbm %s316_s0, 256 }
   0x3   :  { %s16_s13 = sshll.u32 %s239_s12, 4  ;;  %p168_p0 = scmp.ne.s32.totalorder %s316_s0, %s167_s16  ;;  %s17_s13 = int_to_ptr.vmem [resolvable:$true] %s16_s13 }
   0x4   :  { %p171_p1 = scmp.lt.u32.totalorder %s167_s16, %s316_s0 }
   0x6   :  { %p173_p2 = pnand %p171_p1, %p168_p0 }
   0x8   :  { %176 = shalt.err (!%p173_p2)
}
   0x9   :  { %s177_s21 = scalar_lea.vmem %s17_s13, 256  ;;  %p182_p4 = scmp.lt.s32.totalorder %s17_s13, %s17_s13 }
   0xa   :  { %p178_p3 = scmp.ne.s32.totalorder %s17_s13, %s177_s21  ;;  %p183_p5 = scmp.lt.s32.totalorder %s177_s21, %s177_s21 }
   0xc   :  { %p184_p6 = por %p183_p5, %p182_p4 }
   0xe   :  { %p185_p7 = pnand %p184_p6, %p178_p3 }
  0x10   :  { %188 = shalt.err (!%p185_p7)
}
  0x11   :  { %s240_s22 = smov 128   ;;  %s241_s23 = smov 8  }
  0x12   :  { %22 = dma.hbm_to_vmem [thread:$0]  %s316_s0, 256, %s17_s13, [#allocation3], %s240_s22, %s240_s22, %s241_s23  }
  0x13   :  { %s242_s26 = smov [#allocation5]   ;;  %s189_s30 = scalar_lea.hbm %s317_s1, 256 }
  0x14   :  { %s28_s27 = sshll.u32 %s242_s26, 4  ;;  %p190_p8 = scmp.ne.s32.totalorder %s317_s1, %s189_s30  ;;  %s29_s27 = int_to_ptr.vmem [resolvable:$true] %s28_s27 }
  0x15   :  { %p193_p9 = scmp.lt.u32.totalorder %s189_s30, %s317_s1 }
  0x17   :  { %p195_p10 = pnand %p193_p9, %p190_p8 }
  0x19   :  { %198 = shalt.err (!%p195_p10)
}
  0x1a   :  { %s199_s8 = scalar_lea.vmem %s29_s27, 256  ;;  %p204_p12 = scmp.lt.s32.totalorder %s29_s27, %s29_s27 }
  0x1b   :  { %p200_p11 = scmp.ne.s32.totalorder %s29_s27, %s199_s8  ;;  %p205_p13 = scmp.lt.s32.totalorder %s199_s8, %s199_s8 }
  0x1d   :  { %p206_p0 = por %p205_p13, %p204_p12 }
  0x1f   :  { %p207_p1 = pnand %p206_p0, %p200_p11 }
  0x21   :  { %210 = shalt.err (!%p207_p1)
}
  0x22   :  { %s243_s0 = smov 64   ;;  %s244_s9 = smov 4  }
  0x23   :  { %34 = dma.hbm_to_vmem [thread:$0]  %s317_s1, 256, %s29_s27, [#allocation6], %s243_s0, %s243_s0, %s244_s9  }
  0x24   :  { %233 = dma.done.wait [#allocation3], 256  }
  0x25   :  { %234 = vsyncadd [#allocation3], 4294967040 }
  0x26   :  { %235 = dma.done.wait [#allocation6], 256  }
  0x27   :  { %236 = vsyncadd [#allocation6], 4294967040  ;;  %v245_v0 = vmov 0.0   ;;  %vm246_vm0 = vmmov 0   ;;  %v165_v1 = vld [vmem:[#allocation5] sm:$0xff]   ;;  %v166_v2 = vld [vmem:[#allocation5 + $0x8] sm:$0xff]  }
  0x28   :  { %148 = vmatprep.subr.bf16.mxu0 %v245_v0  ;;  %152 = vmatprep.mubr.msk.bf16.mxu0 %vm246_vm0, %v245_v0  ;;  %v44_v3 = vld [vmem:[#allocation2] sm:$0xff]  ;;  %v45_v4 = vld [vmem:[#allocation2 + $0x8] sm:$0xff]  ;;  %vm70_vm1 = vcmask 261120   ;;  %s247_s13 = smov [#allocation7]  }
  0x29   :  { %149 = vmatpush3.bf16.msra.mxu0 %v165_v1  ;;  %v46_v5 = vpack.c.bf16 %v45_v4, %v44_v3  ;;  %v141_v6 = vld [vmem:[%s318_s2] ss:$0 sm:$0xff]  ;;  %s128_s14 = sshll.u32 %s247_s13, 4  ;;  %s129_s14 = int_to_ptr.vmem [resolvable:$true] %s128_s14 }
  0x2a   :  { %150 = vmatprep.subr.bf16.mxu0 %v245_v0  ;;  %s211_s2 = scalar_lea.vmem %s129_s14, 256  ;;  %p216_p3 = scmp.lt.s32.totalorder %s129_s14, %s129_s14 }
  0x2b   :  { %p212_p2 = scmp.ne.s32.totalorder %s129_s14, %s211_s2  ;;  %p217_p4 = scmp.lt.s32.totalorder %s211_s2, %s211_s2 }
  0x2d   :  { %151 = vmatpush3.bf16.msra.mxu0 %v166_v2  ;;  %p218_p5 = por %p217_p4, %p216_p3 }
  0x2f   :  { %p219_p6 = pnand %p218_p5, %p212_p2 }
  0x30   :  { %153 = vmatmul.mubr.msk.bf16.vlgmr.msra.gmra.mrb[0].mxu0 %vm70_vm1, %v46_v5 }
 0x103   :  { %v108_v7 = vpop.f32.mrb[0].mxu0 }
 0x104   :  { %v109_v8 = vadd.f32 %v141_v6, %v108_v7  ;;  %v154_v9 = vpop.f32.mrb[1].mxu0 }
 0x105   :  { %v111_v10 = vpop.f32.mrb[2].mxu0 }
 0x106   :  { %v115_v11 = vmul.f32 0.2, %v109_v8  ;;  %v112_v12 = vadd.f32 %v141_v6, %v111_v10  ;;  %v155_v13 = vpop.f32.mrb[3].mxu0 }
 0x108   :  { %v117_v14 = vmax.f32 %v109_v8, %v115_v11  ;;  %v116_v15 = vmul.f32 0.2, %v112_v12 }
 0x10a   :  { %v119_v16 = vadd.f32 %v117_v14, %v44_v3  ;;  %v118_v17 = vmax.f32 %v112_v12, %v116_v15 }
 0x10c   :  { %121 = vst.msk [vmem:[#allocation7] sm:$0xff] %vm70_vm1, %v119_v16  ;;  %v120_v18 = vadd.f32 %v118_v17, %v45_v4 }
 0x10e   :  { %122 = vst.msk [vmem:[#allocation7 + $0x8] sm:$0xff] %vm70_vm1, %v120_v18 }
 0x10f   :  { %222 = shalt.err (!%p219_p6)
}
 0x110   :  { %s223_s17 = scalar_lea.hbm %s319_s3, 256 }
 0x111   :  { %p224_p7 = scmp.ne.s32.totalorder %s319_s3, %s223_s17  ;;  %p227_p8 = scmp.lt.u32.totalorder %s223_s17, %s319_s3 }
 0x113   :  { %p229_p9 = pnand %p227_p8, %p224_p7 }
 0x115   :  { %232 = shalt.err (!%p229_p9)
}
 0x116   :  { %134 = dma.vmem_to_hbm [thread:$0]  %s129_s14, 256, %s319_s3, [#allocation4], %s240_s22, %s240_s22, %s241_s23  }
 0x117   :  { %237 = dma.done.wait [#allocation4], 256  }
 0x118   :  { %238 = vsyncadd [#allocation4], 4294967040 }
 0x119   :  { %138 = vsyncpa [#allocation3], 1 }
 0x11a   :  { %139 = vsyncpa [#allocation6], 1 }
 0x11b   :  { %140 = vsyncpa [#allocation4], 1 }

</bundles_post_ra>
